<compile_context>
chip_gen: v7x
topology: tpu7x:2x2x1
jax: 0.10.0
libtpu: 0.0.40
codegen_flags: <defaults>
</compile_context>

<pallas_src>
import functools

import jax
import jax.numpy as jnp
from jax.experimental import pallas as pl
from jax.experimental.pallas import tpu as pltpu

LN_EPS = 1e-5      # torch.nn.LayerNorm default
_TM_MAX = 4096     # row-tile ceiling; VMEM budget is the real bound


def _round_up(x, m):
    return -(-x // m) * m


def _vmem_plan():
    """Generation-aware (scoped VMEM limit, tile budget) in bytes."""
    try:
        cap = int(pltpu.get_tpu_info().vmem_capacity_bytes)
    except Exception:  # non-TPU / interpret / older build: be conservative
        cap = 64 << 20
    if cap >= (100 << 20):        # v5e / v6e: 128 MiB physical VMEM
        return 80 << 20, 56 << 20
    return 32 << 20, 22 << 20     # v7x: 64 MiB physical -> modest scoped request


def _pick_tm(m_rows, d_in, d_model, d_out_mxu, in_bytes, w_bytes, budget):
    """Pick a row tile that fits the VMEM budget and keeps >=2 grid steps."""
    # Resident operands (single-buffered via pl.Buffered(1)): weight + colsum + bias.
    resident = d_in * d_out_mxu * w_bytes + 2 * d_model * 4
    # Per-row streamed/temporary bytes: double-buffered x and output tiles,
    # plus f32 transients (stats up-cast of x, f32 matmul accumulator).
    per_row = 2 * d_in * in_bytes + 2 * d_model * in_bytes + d_in * 4 + d_out_mxu * 4
    avail = max(budget - resident, per_row * 16)
    tm = max(16, min(_TM_MAX, avail // per_row))
    if tm >= 256:
        tm -= tm % 256            # MXU-friendly when large
    else:
        tm -= tm % 16             # sublane-aligned (covers f32 and bf16 packing)
    m_aligned = _round_up(m_rows, 16)
    tm = min(tm, m_aligned)
    # v7x has 2 TensorCores: keep >= 2 (roughly balanced) grid steps whenever
    # there is enough work, so the parallel row axis can be split across cores.
    if m_rows >= 32 and m_rows <= 2 * tm:
        tm = min(tm, _round_up(-(-m_rows // 2), 16))
    return max(16, tm)


def _segmerge_kernel(x_ref, w_ref, cs_ref, b_ref, o_ref, *, d_model, precision):
    # x_ref : (tm, D_in)          merged segments for tm rows (original dtype)
    # w_ref : (D_in, D_out_mxu)   gamma-folded weight, columns zero-padded to 128k
    # cs_ref: (1, d_model)        column sums of the folded weight (f32)
    # b_ref : (1, d_model)        beta-folded bias (f32)
    # o_ref : (tm, d_model)
    x = x_ref[...]
    xf = x.astype(jnp.float32)
    inv_d = 1.0 / xf.shape[-1]

    # One-pass LayerNorm statistics (E[x], E[x^2]) in f32.
    s1 = jnp.sum(xf, axis=-1, keepdims=True)
    s2 = jnp.sum(xf * xf, axis=-1, keepdims=True)
    mean = s1 * inv_d
    var = jnp.maximum(s2 * inv_d - mean * mean, 0.0)
    inv_std = jax.lax.rsqrt(var + LN_EPS)

    # Raw x feeds the MXU; normalization is applied to the (tm, d_model) result.
    w = w_ref[...]
    y = jnp.dot(x.astype(w.dtype), w,
                preferred_element_type=jnp.float32, precision=precision)
    y = y[:, :d_model]                       # no-op when d_model % 128 == 0
    y = inv_std * (y - mean * cs_ref[...]) + b_ref[...]
    o_ref[...] = y.astype(o_ref.dtype)


@functools.partial(jax.jit, static_argnames=("win_size",))
def seg_merging_forward(x, gamma, beta, weight_t, bias, *, win_size):
    """x: (B, ts_d, seg_num, d_model) -> (B, ts_d, ceil(seg_num/win), d_model)."""
    B, ts_d, seg_num, d_model = x.shape

    # --- glue: pad segment axis by repeating the tail (matches torch.cat) ---
    pad_num = seg_num % win_size
    if pad_num != 0:
        pad_num = win_size - pad_num
        x = jnp.concatenate([x, x[:, :, -pad_num:, :]], axis=2)
    new_seg = x.shape[2] // win_size
    d_in = win_size * d_model

    # --- glue: i::win_size gather + concat(-1) == contiguous reshape ---
    x_flat = x.reshape(B * ts_d * new_seg, d_in)
    M = x_flat.shape[0]

    # --- fold LayerNorm affine into the projection, and LN through the GEMM ---
    f32 = jnp.float32
    w_folded = gamma.astype(f32)[:, None] * weight_t.astype(f32)           # (d_in, d_model)
    b_folded = (beta.astype(f32) @ weight_t.astype(f32)
                + bias.astype(f32)).reshape(1, d_model)                    # (1, d_model)

    # bf16 MXU feed when activations are bf16; exact f32 path otherwise.
    mxu_dtype = jnp.bfloat16 if x.dtype == jnp.bfloat16 else jnp.float32
    w_mxu = w_folded.astype(mxu_dtype)
    colsum = jnp.sum(w_mxu.astype(f32), axis=0, keepdims=True)             # (1, d_model)

    # MXU feed gets lane-padded (zero) columns; the HBM output stays d_model wide.
    d_out_mxu = _round_up(d_model, 128)
    if d_out_mxu != d_model:
        w_mxu = jnp.pad(w_mxu, ((0, 0), (0, d_out_mxu - d_model)))

    in_bytes = jnp.dtype(x.dtype).itemsize
    w_bytes = jnp.dtype(mxu_dtype).itemsize
    vmem_limit, vmem_budget = _vmem_plan()
    tm = _pick_tm(M, d_in, d_model, d_out_mxu, in_bytes, w_bytes, vmem_budget)
    grid = (pl.cdiv(M, tm),)      # partial last block instead of a jnp.pad copy

    precision = (jax.lax.Precision.DEFAULT if mxu_dtype == jnp.bfloat16
                 else jax.lax.Precision.HIGHEST)
    kernel = functools.partial(_segmerge_kernel, d_model=d_model, precision=precision)

    cost = pl.CostEstimate(
        flops=2 * M * d_in * d_out_mxu,
        bytes_accessed=(M * d_in * in_bytes
                        + d_in * d_out_mxu * w_bytes
                        + M * d_model * in_bytes),
        transcendentals=M,
    )

    out = pl.pallas_call(
        kernel,
        out_shape=jax.ShapeDtypeStruct((M, d_model), x.dtype),
        grid_spec=pltpu.PrefetchScalarGridSpec(
            num_scalar_prefetch=0,
            grid=grid,
            in_specs=[
                pl.BlockSpec((tm, d_in), lambda i: (i, 0)),
                # Constant operands: single-buffered (no need to double-buffer).
                pl.BlockSpec((d_in, d_out_mxu), lambda i: (0, 0),
                             pipeline_mode=pl.Buffered(1)),
                pl.BlockSpec((1, d_model), lambda i: (0, 0),
                             pipeline_mode=pl.Buffered(1)),
                pl.BlockSpec((1, d_model), lambda i: (0, 0),
                             pipeline_mode=pl.Buffered(1)),
            ],
            out_specs=pl.BlockSpec((tm, d_model), lambda i: (i, 0)),
        ),
        compiler_params=pltpu.CompilerParams(
            # "parallel" already lets the row axis shard across v7x's 2 cores;
            # CORE_PARALLEL not used to stay portable across v5e/v6e builds.
            dimension_semantics=("parallel",),
            vmem_limit_bytes=vmem_limit,
        ),
        cost_estimate=cost,
    )(x_flat, w_mxu, colsum, b_folded)

    return out.reshape(B, ts_d, new_seg, d_model)


def _reference(x, gamma, beta, weight_t, bias, win_size):
    """Pure-JAX reference mirroring the PyTorch forward (f32 math)."""
    pad_num = x.shape[2] % win_size
    if pad_num != 0:
        pad_num = win_size - pad_num
        x = jnp.concatenate([x, x[:, :, -pad_num:, :]], axis=2)
    segs = [x[:, :, i::win_size, :] for i in range(win_size)]
    xm = jnp.concatenate(segs, axis=-1).astype(jnp.float32)
    mean = jnp.mean(xm, axis=-1, keepdims=True)
    var = jnp.mean((xm - mean) ** 2, axis=-1, keepdims=True)
    xn = (xm - mean) / jnp.sqrt(var + LN_EPS)
    xn = xn * gamma + beta
    return xn @ weight_t + bias


if __name__ == "__main__":
    # Small, forward-consistent shapes; seg_num=7 exercises the padding path,
    # and M = 2*4*4 = 32 rows gives a 2-step grid (both v7x cores active).
    B, ts_d, seg_num, d_model = 2, 4, 7, 32
    win_size = 2
    d_in = win_size * d_model

    key = jax.random.PRNGKey(0)
    kx, kw, kb, kg, kbt = jax.random.split(key, 5)

    x = jax.random.normal(kx, (B, ts_d, seg_num, d_model), dtype=jnp.float32)
    # Linear is (out, in) in torch -> store transposed (in, out).
    weight_t = jax.random.normal(kw, (d_in, d_model), dtype=jnp.float32) * (1.0 / d_in ** 0.5)
    bias = jax.random.normal(kb, (d_model,), dtype=jnp.float32) * 0.01
    gamma = 1.0 + 0.1 * jax.random.normal(kg, (d_in,), dtype=jnp.float32)
    beta = 0.1 * jax.random.normal(kbt, (d_in,), dtype=jnp.float32)

    # f32 path (HIGHEST-precision MXU feed) -> tight tolerance.
    out = jax.block_until_ready(
        seg_merging_forward(x, gamma, beta, weight_t, bias, win_size=win_size))
    ref = _reference(x, gamma, beta, weight_t, bias, win_size)
    assert out.shape == ref.shape, (out.shape, ref.shape)
    max_err = float(jnp.max(jnp.abs(out - ref)))
    assert jnp.allclose(out, ref, atol=1e-4, rtol=1e-4), max_err

    # bf16 path (halved DMA bytes + bf16 MXU feed) -> looser tolerance.
    xb = x.astype(jnp.bfloat16)
    outb = jax.block_until_ready(
        seg_merging_forward(xb, gamma, beta, weight_t, bias, win_size=win_size))
    refb = _reference(xb.astype(jnp.float32), gamma, beta, weight_t, bias, win_size)
    assert outb.shape == refb.shape
    assert jnp.allclose(outb.astype(jnp.float32), refb, atol=5e-2, rtol=5e-2), \
        float(jnp.max(jnp.abs(outb.astype(jnp.float32) - refb)))

    print("KERNEL_OK")
</pallas_src>

<mosaic_0001>
module attributes {stable_mosaic.version = 11 : i64} {
  func.func @_segmerge_kernel(%arg0: i32, %arg1: memref<16x64xf32, #tpu.memory_space<vmem>>, %arg2: memref<64x128xf32, #tpu.memory_space<vmem>>, %arg3: memref<1x32xf32, #tpu.memory_space<vmem>>, %arg4: memref<1x32xf32, #tpu.memory_space<vmem>>, %arg5: memref<16x32xf32, #tpu.memory_space<vmem>>) attributes {dimension_semantics = [#tpu.dimension_semantics<parallel>], iteration_bounds = array<i64: 2>, scalar_prefetch = 0 : i64, scratch_operands = 0 : i64, tpu.core_type = #tpu.core_type<tc>, window_params = [{transform_indices = @transform_0, window_bounds = array<i64: 16, 64>}, {pipeline_mode = #tpu.pipeline_mode<synchronous>, transform_indices = @transform_1, window_bounds = array<i64: 64, 128>}, {pipeline_mode = #tpu.pipeline_mode<synchronous>, transform_indices = @transform_2, window_bounds = array<i64: 1, 32>}, {pipeline_mode = #tpu.pipeline_mode<synchronous>, transform_indices = @transform_3, window_bounds = array<i64: 1, 32>}, {transform_indices = @transform_4, window_bounds = array<i64: 16, 32>}]} {
    %c0 = arith.constant 0 : index
    %c0_0 = arith.constant 0 : index
    %0 = vector.load %arg1[%c0, %c0_0] : memref<16x64xf32, #tpu.memory_space<vmem>>, vector<16x64xf32>
    %cst = arith.constant dense<0.000000e+00> : vector<16xf32>
    %1 = vector.multi_reduction <add>, %0, %cst [1] : vector<16x64xf32> to vector<16xf32>
    %2 = vector.shape_cast %1 : vector<16xf32> to vector<16x1xf32>
    %3 = arith.mulf %0, %0 : vector<16x64xf32>
    %cst_1 = arith.constant dense<0.000000e+00> : vector<16xf32>
    %4 = vector.multi_reduction <add>, %3, %cst_1 [1] : vector<16x64xf32> to vector<16xf32>
    %5 = vector.shape_cast %4 : vector<16xf32> to vector<16x1xf32>
    %cst_2 = arith.constant 1.562500e-02 : f32
    %6 = vector.broadcast %cst_2 : f32 to vector<16x1xf32>
    %7 = arith.mulf %2, %6 : vector<16x1xf32>
    %cst_3 = arith.constant 1.562500e-02 : f32
    %8 = vector.broadcast %cst_3 : f32 to vector<16x1xf32>
    %9 = arith.mulf %5, %8 : vector<16x1xf32>
    %10 = arith.mulf %7, %7 : vector<16x1xf32>
    %11 = arith.subf %9, %10 : vector<16x1xf32>
    %cst_4 = arith.constant 0.000000e+00 : f32
    %12 = vector.broadcast %cst_4 : f32 to vector<16x1xf32>
    %13 = arith.maximumf %11, %12 : vector<16x1xf32>
    %cst_5 = arith.constant 9.99999974E-6 : f32
    %14 = vector.broadcast %cst_5 : f32 to vector<16x1xf32>
    %15 = arith.addf %13, %14 : vector<16x1xf32>
    %16 = math.rsqrt %15 : vector<16x1xf32>
    %c0_6 = arith.constant 0 : index
    %c0_7 = arith.constant 0 : index
    %17 = vector.load %arg2[%c0_6, %c0_7] : memref<64x128xf32, #tpu.memory_space<vmem>>, vector<64x128xf32>
    %cst_8 = arith.constant dense<0.000000e+00> : vector<16x128xf32>
    %18 = tpu.matmul %0, %17, %cst_8 {dimension_numbers = #tpu.dot_dimension_numbers<[1], [0], [0], [1], [0, 0, 1, 1], [], []>, precision = #tpu.contract_precision<fp32>} : vector<16x64xf32>, vector<64x128xf32>, vector<16x128xf32> -> vector<16x128xf32>
    %19 = vector.extract_strided_slice %18 {offsets = [0, 0], sizes = [16, 32], strides = [1, 1]} : vector<16x128xf32> to vector<16x32xf32>
    %c0_9 = arith.constant 0 : index
    %c0_10 = arith.constant 0 : index
    %20 = vector.load %arg3[%c0_9, %c0_10] : memref<1x32xf32, #tpu.memory_space<vmem>>, vector<1x32xf32>
    %21 = vector.broadcast %7 : vector<16x1xf32> to vector<16x32xf32>
    %22 = vector.broadcast %20 : vector<1x32xf32> to vector<16x32xf32>
    %23 = arith.mulf %21, %22 : vector<16x32xf32>
    %24 = arith.subf %19, %23 : vector<16x32xf32>
    %25 = vector.broadcast %16 : vector<16x1xf32> to vector<16x32xf32>
    %26 = arith.mulf %25, %24 : vector<16x32xf32>
    %c0_11 = arith.constant 0 : index
    %c0_12 = arith.constant 0 : index
    %27 = vector.load %arg4[%c0_11, %c0_12] : memref<1x32xf32, #tpu.memory_space<vmem>>, vector<1x32xf32>
    %28 = vector.broadcast %27 : vector<1x32xf32> to vector<16x32xf32>
    %29 = arith.addf %26, %28 : vector<16x32xf32>
    %c0_13 = arith.constant 0 : index
    %c0_14 = arith.constant 0 : index
    %30 = vector.load %arg5[%c0_13, %c0_14] : memref<16x32xf32, #tpu.memory_space<vmem>>, vector<16x32xf32>
    tpu.vector_store %arg5[%c0_13, %c0_14], %29 {strides = array<i32>} : memref<16x32xf32, #tpu.memory_space<vmem>>, vector<16x32xf32>,
    return
  }
  func.func @transform_0(%arg0: i32) -> (i32, i32) {
    %c0_i32 = arith.constant 0 : i32
    %c0_i32_0 = arith.constant 0 : i32
    return %arg0, %c0_i32 : i32, i32
  }
  func.func @transform_1(%arg0: i32) -> (i32, i32) {
    %c0_i32 = arith.constant 0 : i32
    %c0_i32_0 = arith.constant 0 : i32
    %c0_i32_1 = arith.constant 0 : i32
    return %c0_i32, %c0_i32_0 : i32, i32
  }
  func.func @transform_2(%arg0: i32) -> (i32, i32) {
    %c0_i32 = arith.constant 0 : i32
    %c0_i32_0 = arith.constant 0 : i32
    %c0_i32_1 = arith.constant 0 : i32
    return %c0_i32, %c0_i32_0 : i32, i32
  }
  func.func @transform_3(%arg0: i32) -> (i32, i32) {
    %c0_i32 = arith.constant 0 : i32
    %c0_i32_0 = arith.constant 0 : i32
    %c0_i32_1 = arith.constant 0 : i32
    return %c0_i32, %c0_i32_0 : i32, i32
  }
  func.func @transform_4(%arg0: i32) -> (i32, i32) {
    %c0_i32 = arith.constant 0 : i32
    %c0_i32_0 = arith.constant 0 : i32
    return %arg0, %c0_i32 : i32, i32
  }
}

</mosaic_0001>

<bundles_post_ra>
// kernel: seg_merging_forward.1
= control target key start
LH: loop header
LB: loop body
LE: loop exit
PB: predicated region body
PF: predicated region fallthrough
CT: control target
= control target key end

     0   :  { %9 = vsyncpa [#allocation3], 0  ;;  %s1589_s0 = inlined_call_operand.vmem [shape: f32[32,64], index: 0, kind: input, shape index: {}]   ;;  %s1590_s1 = inlined_call_operand.vmem [shape: f32[64,128], index: 1, kind: input, shape index: {}]   ;;  %s1591_s2 = inlined_call_operand.vmem [shape: f32[1,32], index: 2, kind: input, shape index: {}]   ;;  %s1592_s3 = inlined_call_operand.vmem [shape: f32[1,32], index: 3, kind: input, shape index: {}]   ;;  %s1593_s4 = inlined_call_operand.hbm [shape: f32[32,32], index: 4, kind: output, shape index: {}]  }
   0x1   :  { %11 = vsyncpa [#allocation3 + $0x1], 0  ;;  %s1357_s15 = smov 0   ;;  %s1359_s16 = smov 0  }
   0x2   :  { %s1361_s17 = smov 0   ;;  %s1363_s18 = smov 0  }
   0x3 LB: > { %s1378_s19 = sadd.s32 4294967295, %s1327_s18   ;;  %s925_s20 = sadd.s32 4294967294, %s1327_s18   ;;  %s1327_s18 = sphi %s1363_s18, %s1599_s18   ;;  %s1323_s17 = sphi %s1361_s17, %s1598_s17   ;;  %s1319_s16 = sphi %s1359_s16, %s1597_s16   ;;  %s1315_s15 = sphi %s1357_s15, %s1596_s15  }
   0x4   : > { %s1382_s21 = sadd.s32 1, %s1327_s18   ;;  %s113_s22 = sadd.s32 1, %s1323_s17 }
   0x5   : > { %s110_s23 = ssub.s32 %s1327_s18, %s1382_s21  ;;  %p123_p0 = scmp.ne.s32.totalorder %s1323_s17, %s1319_s16 }
   0x6   : > { %p111_p1 = scmp.eq.s32.totalorder %s110_s23, 0  ;;  %p124_p2 = scmp.eq.s32.totalorder %s1378_s19, 1 }
   0x7   : > { %p129_p3 = scmp.ne.s32.totalorder %s1319_s16, %s1315_s15  ;;  %p130_p4 = scmp.eq.s32.totalorder %s925_s20, 1 }
   0x8   : > { %s1393_s24 = scalar_select %p111_p1, %s1323_s17, %s113_s22  }
   0x9   : > { %p1395_p5 = por %p124_p2, %p123_p0  ;;  %p1399_p6 = por %p130_p4, %p129_p3 }
   0xa   : > { %p928_p7 = scmp.ge.s32.totalorder %s1327_s18, 1  ;;  %p166_p8 = scmp.lt.s32.totalorder %s1327_s18, 3 }
   0xc   : > { %p167_p9 = pnand %p928_p7, %p166_p8 }
   0xd   : > { %v230_v0 = vld [vmem:[%s1590_s1] sm:$0xff] (!%p167_p9)  ;;  %v231_v1 = vld [vmem:[%s1590_s1 + $0x8] sm:$0xff] (!%p167_p9)  ;;  %v232_v2 = vld [vmem:[%s1590_s1 + $0x10] sm:$0xff] (!%p167_p9)  ;;  %s930_s7 = sshll.u32 (!%p167_p9), %s1378_s19, 1  ;;  %vm201_vm0 = vcmask (!%p167_p9), 523264   ;;  %s189_s5 = sand.u32 (!%p167_p9), 1, %s1319_s16  }
   0xe   : > { %170 = sbr.rel (%p167_p9) target bundleno = 305 (0x131), region = 36  ;;  %v245_v3 = vand.u32 (!%p167_p9), 4294901760, %v230_v0  ;;  %v248_v4 = vand.u32 (!%p167_p9), 4294901760, %v231_v1  ;;  %v233_v5 = vld [vmem:[%s1590_s1 + $0x18] sm:$0xff] (!%p167_p9)  ;;  %v251_v6 = vand.u32 (!%p167_p9), 4294901760, %v232_v2  ;;  %v234_v7 = vld [vmem:[%s1590_s1 + $0x20] sm:$0xff] (!%p167_p9) }
   0xf   : > { %v235_v8 = vld [vmem:[%s1590_s1 + $0x28] sm:$0xff] (!%p167_p9)  ;;  %v254_v9 = vand.u32 (!%p167_p9), 4294901760, %v233_v5  ;;  %v257_v10 = vand.u32 (!%p167_p9), 4294901760, %v234_v7  ;;  %v236_v11 = vld [vmem:[%s1590_s1 + $0x30] sm:$0xff] (!%p167_p9)  ;;  %v237_v12 = vld [vmem:[%s1590_s1 + $0x38] sm:$0xff] (!%p167_p9)  ;;  %p193_p10 = scmp.lt.s32.totalorder (!%p167_p9), %s930_s7, 3 }
  0x10   : > { %v1430_v13 = vpack.c.bf16 (!%p167_p9), %v248_v4, %v245_v3  ;;  %v260_v14 = vand.u32 (!%p167_p9), 4294901760, %v235_v8  ;;  %v263_v15 = vand.u32 (!%p167_p9), 4294901760, %v236_v11  ;;  %v1432_v16 = vsub.f32 (!%p167_p9), %v230_v0, %v245_v3  ;;  %s929_s6 = sshll.u32 (!%p167_p9), %s189_s5, 4  ;;  %s939_s11 = sshll.u32 (!%p167_p9), %s1378_s19, 8 }
  0x11   : > { %v1434_v17 = vpack.c.bf16 (!%p167_p9), %v254_v9, %v251_v6  ;;  %v266_v18 = vand.u32 (!%p167_p9), 4294901760, %v237_v12  ;;  %v1436_v19 = vsub.f32 (!%p167_p9), %v231_v1, %v248_v4  ;;  %v1438_v20 = vsub.f32 (!%p167_p9), %v232_v2, %v251_v6  ;;  %s191_s12 = scalar_lea.vmem (!%p167_p9), [#allocation2], %s929_s6  ;;  %s1544_s22 = scalar_lea.hbm (!%p167_p9), %s1593_s4, %s939_s11 }
  0x12   : > { %1115 = vmatprep.subr.bf16.mxu1 (!%p167_p9), %v1430_v13  ;;  %1163 = vmatprep.subr.bf16.mxu0 (!%p167_p9), %v1430_v13  ;;  %v340_v21 = vand.u32 (!%p167_p9), 4294901760, %v1432_v16  ;;  %v1443_v22 = vsub.f32 (!%p167_p9), %v233_v5, %v254_v9  ;;  %v1449_v25 = vsub.f32 (!%p167_p9), %v234_v7, %v257_v10  ;;  %v1451_v26 = vsub.f32 (!%p167_p9), %v235_v8, %v260_v14  ;;  %s863_s13 = sshll.u32 (!%p167_p9), %s191_s12, 4  ;;  %s1548_s19 = scalar_lea.sflag (!%p167_p9), [#allocation3], %s189_s5  ;;  %s1546_s13 = int_to_ptr.vmem [resolvable:$true] %s863_s13 }
  0x13   : > { %1117 = vmatpush3.bf16.msra.mxu1 (!%p167_p9), %v1430_v13  ;;  %1165 = vmatpush3.bf16.msra.mxu0 (!%p167_p9), %v1430_v13  ;;  %v347_v23 = vand.u32 (!%p167_p9), 4294901760, %v1436_v19  ;;  %v354_v24 = vand.u32 (!%p167_p9), 4294901760, %v1438_v20  ;;  %v1455_v27 = vpack.c.bf16 (!%p167_p9), %v260_v14, %v257_v10  ;;  %v1462_v30 = vpack.c.bf16 (!%p167_p9), %v266_v18, %v263_v15  ;;  %s1265_s23 = scalar_lea.vmem (!%p167_p9), %s1546_s13, 256 }
  0x14   : > { %1119 = vmatprep.subr.bf16.mxu1 (!%p167_p9), %v1434_v17  ;;  %1167 = vmatprep.subr.bf16.mxu0 (!%p167_p9), %v1434_v17  ;;  %v341_v28 = vsub.f32 (!%p167_p9), %v1432_v16, %v340_v21  ;;  %v361_v29 = vand.u32 (!%p167_p9), 4294901760, %v1443_v22  ;;  %v368_v40 = vand.u32 (!%p167_p9), 4294901760, %v1449_v25  ;;  %v375_v41 = vand.u32 (!%p167_p9), 4294901760, %v1451_v26  ;;  %p1266_p11 = scmp.ne.s32.totalorder (!%p167_p9), %s1546_s13, %s1265_s23 }
  0x15   : > { %s1601_s7 = smov (!%p193_p10, %s930_s7), 3  ;;  %v348_v33 = vsub.f32 %v1436_v19, %v347_v23  ;;  %v355_v36 = vsub.f32 %v1438_v20, %v354_v24  ;;  %v1479_v44 = vsub.f32 %v236_v11, %v263_v15  ;;  %v1481_v45 = vsub.f32 %v237_v12, %v266_v18 }
  0x16   : > { %s931_s27 = sshll.u32 %s1601_s7, 3  ;;  %v362_v37 = vsub.f32 %v1443_v22, %v361_v29  ;;  %v342_v42 = vand.u32 4294901760, %v341_v28  ;;  %v1178_v48 = vpack.c.bf16 %v347_v23, %v340_v21  ;;  %v369_v53 = vsub.f32 %v1449_v25, %v368_v40  ;;  %p1267_p12 = pnand %p1266_p11, %p1395_p5 }
  0x17   : > { %s196_s30 = scalar_lea.vmem %s1589_s0, %s931_s27  ;;  %1121 = vmatpush3.bf16.msra.mxu1 %v1434_v17  ;;  %1169 = vmatpush3.bf16.msra.mxu0 %v1434_v17  ;;  %v349_v43 = vand.u32 4294901760, %v348_v33  ;;  %v356_v49 = vand.u32 4294901760, %v355_v36  ;;  %v376_v54 = vsub.f32 %v1451_v26, %v375_v41  ;;  %v382_v56 = vand.u32 4294901760, %v1479_v44  ;;  %v932_v36 = vld [vmem:[%s1591_s2] ss:$0 sm:$0xff]  ;;  %s1329_s27 = smov [#allocation2]  }
  0x18   : > { %v199_v31 = vld [vmem:[%s196_s30] sm:$0xff]  ;;  %v200_v32 = vld [vmem:[%s196_s30 + $0x8] sm:$0xff]  ;;  %1123 = vmatprep.subr.bf16.mxu1 %v1455_v27  ;;  %1171 = vmatprep.subr.bf16.mxu0 %v1455_v27  ;;  %v363_v50 = vand.u32 4294901760, %v362_v37  ;;  %v389_v57 = vand.u32 4294901760, %v1481_v45  ;;  %v1182_v62 = vpack.c.bf16 %v361_v29, %v354_v24  ;;  %v370_v2 = vand.u32 4294901760, %v369_v53  ;;  %p1268_p13 = pneg %p1267_p12  ;;  %s1269_s28 = sshll.u32 %s1329_s27, 4  ;;  %s1270_s28 = int_to_ptr.vmem [resolvable:$false] %s1269_s28 }
  0x19   : > { %v239_v34 = vsel %vm201_vm0, %v199_v31, 0  ;;  %v242_v35 = vsel %vm201_vm0, %v200_v32, 0  ;;  %v1130_v55 = vpack.c.bf16 %v349_v43, %v342_v42  ;;  %v202_v58 = vsel %vm201_vm0, %v199_v31, 0.0  ;;  %s1271_s29 = scalar_lea.vmem %s1270_s28, 512  ;;  %p1272_p0 = scmp.lt.s32.totalorder %s1546_s13, %s1270_s28 }
  0x1a   : > { %v1471_v38 = vand.u32 4294901760, %v239_v34  ;;  %v1473_v39 = vand.u32 4294901760, %v242_v35  ;;  %v1134_v61 = vpack.c.bf16 %v363_v50, %v356_v49  ;;  %203 = vadd.xlane.f32.xlu0 %v202_v58  ;;  %v208_v63 = vmul.f32 %v199_v31, %v199_v31  ;;  %p1273_p1 = scmp.lt.s32.totalorder %s1271_s29, %s1265_s23 }
  0x1b   : > { %1125 = vmatpush3.bf16.msra.mxu1 %v1455_v27  ;;  %1173 = vmatpush3.bf16.msra.mxu0 %v1455_v27  ;;  %v377_v3 = vand.u32 4294901760, %v376_v54  ;;  %v383_v4 = vsub.f32 %v1479_v44, %v382_v56  ;;  %v390_v5 = vsub.f32 %v1481_v45, %v389_v57  ;;  %v209_v7 = vmul.f32 %v200_v32, %v200_v32 }
  0x1c   : > { %v1484_v46 = vsub.f32 %v239_v34, %v1471_v38  ;;  %v1487_v47 = vsub.f32 %v242_v35, %v1473_v39  ;;  %1127 = vmatprep.subr.bf16.mxu1 %v1462_v30  ;;  %1175 = vmatprep.subr.bf16.mxu0 %v1462_v30  ;;  %v210_v6 = vsel %vm201_vm0, %v208_v63, 0.0  ;;  %v205_v8 = vsel %vm201_vm0, %v200_v32, 0.0  ;;  %p1274_p2 = por %p1273_p1, %p1272_p0 }
  0x1d   : > { %211 = vadd.xlane.f32.xlu1 %v210_v6  ;;  %v213_v9 = vsel %vm201_vm0, %v209_v7, 0.0  ;;  %v1138_v10 = vpack.c.bf16 %v377_v3, %v370_v2  ;;  %v1186_v11 = vpack.c.bf16 %v375_v41, %v368_v40  ;;  %v384_v12 = vand.u32 4294901760, %v383_v4 }
  0x1e   : > { %v319_v51 = vand.u32 4294901760, %v1484_v46  ;;  %v329_v52 = vand.u32 4294901760, %v1487_v47  ;;  %v391_v14 = vand.u32 4294901760, %v390_v5  ;;  %206 = vadd.xlane.f32.xlu0 %v205_v8  ;;  %v1190_v18 = vpack.c.bf16 %v389_v57, %v382_v56  ;;  %p1275_p3 = pnand %p1274_p2, %p1268_p13 }
  0x1f   : > { %1129 = vmatpush3.bf16.msra.mxu1 %v1462_v30  ;;  %1177 = vmatpush3.bf16.msra.mxu0 %v1462_v30  ;;  %v1146_v21 = vpack.c.bf16 %v1436_v19, %v1432_v16  ;;  %v1150_v23 = vpack.c.bf16 %v1443_v22, %v1438_v20  ;;  %v1154_v16 = vpack.c.bf16 %v1451_v26, %v1449_v25  ;;  %vm846_vm1 = vcmask 261120  }
  0x20   : > { %v320_v59 = vsub.f32 %v1484_v46, %v319_v51  ;;  %1073 = vmatprep.mubr.f32.mxu0 %v319_v51  ;;  %v330_v60 = vsub.f32 %v1487_v47, %v329_v52  ;;  %1131 = vmatprep.subr.bf16.mxu1 %v1130_v55  ;;  %v1142_v15 = vpack.c.bf16 %v391_v14, %v384_v12 }
  0x21   : > { %1179 = vmatprep.subr.bf16.mxu0 %v1178_v48  ;;  %214 = vadd.xlane.f32.xlu1 %v213_v9  ;;  %v1158_v19 = vpack.c.bf16 %v1481_v45, %v1479_v44 }
  0x22   : > { %v321_v0 = vand.u32 4294901760, %v320_v59  ;;  %v331_v1 = vand.u32 4294901760, %v330_v60  ;;  %1074 = vmatmul.mubr.f32.vlgmr.msra.gmra.mrb[0].mxu0 %v329_v52 }
  0x23   : > { %1181 = vmatpush3.bf16.msra.mxu0 %v1178_v48  ;;  %1092 = vmatprep.mubr.f32.mxu0 %v1471_v38 }
  0x24   : > { %1016 = vmatprep.mubr.f32.mxu1 %v321_v0  ;;  %1183 = vmatprep.subr.bf16.mxu0 %v1182_v62 }
  0x25   : > { %1017 = vmatmul.mubr.f32.vlgmr.msra.gmra.mrb[0].mxu1 %v331_v1 }
  0x26   : > { %1133 = vmatpush3.bf16.msra.mxu1 %v1130_v55  ;;  %1035 = vmatprep.mubr.f32.mxu1 %v1471_v38 }
  0x27   : > { %1135 = vmatprep.subr.bf16.mxu1 %v1134_v61  ;;  %1185 = vmatpush3.bf16.msra.mxu0 %v1182_v62 }
  0x28   : > { %1187 = vmatprep.subr.bf16.mxu0 %v1186_v11 }
  0x2a   : > { %1137 = vmatpush3.bf16.msra.mxu1 %v1134_v61 }
  0x2b   : > { %1139 = vmatprep.subr.bf16.mxu1 %v1138_v10  ;;  %1189 = vmatpush3.bf16.msra.mxu0 %v1186_v11 }
  0x2c   : > { %1191 = vmatprep.subr.bf16.mxu0 %v1190_v18 }
  0x2e   : > { %1141 = vmatpush3.bf16.msra.mxu1 %v1138_v10 }
  0x2f   : > { %1143 = vmatprep.subr.bf16.mxu1 %v1142_v15  ;;  %1193 = vmatpush3.bf16.msra.mxu0 %v1190_v18 }
  0x30   : > { %1195 = vmatprep.subr.bf16.mxu0 %v1430_v13 }
  0x32   : > { %1145 = vmatpush3.bf16.msra.mxu1 %v1142_v15  ;;  %1093 = vmatmul.mubr.f32.vlgmr.msra.gmra.mrb[0].mxu0 %v1473_v39 }
  0x33   : > { %1147 = vmatprep.subr.bf16.mxu1 %v1146_v21  ;;  %1197 = vmatpush3.bf16.msra.mxu0 %v1430_v13 }
  0x34   : > { %1199 = vmatprep.subr.bf16.mxu0 %v1434_v17  ;;  %1111 = vmatprep.mubr.f32.mxu0 %v1471_v38 }
  0x35   : > { %1036 = vmatmul.mubr.f32.vlgmr.msra.gmra.mrb[0].mxu1 %v1473_v39 }
  0x36   : > { %1149 = vmatpush3.bf16.msra.mxu1 %v1146_v21  ;;  %1054 = vmatprep.mubr.f32.mxu1 %v1484_v46 }
  0x37   : > { %1151 = vmatprep.subr.bf16.mxu1 %v1150_v23  ;;  %1201 = vmatpush3.bf16.msra.mxu0 %v1434_v17 }
  0x38   : > { %1203 = vmatprep.subr.bf16.mxu0 %v1455_v27 }
  0x3a   : > { %1153 = vmatpush3.bf16.msra.mxu1 %v1150_v23 }
  0x3b   : > { %1155 = vmatprep.subr.bf16.mxu1 %v1154_v16  ;;  %1205 = vmatpush3.bf16.msra.mxu0 %v1455_v27 }
  0x3c   : > { %1207 = vmatprep.subr.bf16.mxu0 %v1462_v30 }
  0x3e   : > { %1157 = vmatpush3.bf16.msra.mxu1 %v1154_v16 }
  0x3f   : > { %1159 = vmatprep.subr.bf16.mxu1 %v1158_v19  ;;  %1209 = vmatpush3.bf16.msra.mxu0 %v1462_v30 }
  0x42   : > { %1161 = vmatpush3.bf16.msra.mxu1 %v1158_v19  ;;  %1112 = vmatmul.mubr.f32.vlgmr.msra.gmra.mrb[0].mxu0 %v1473_v39 }
  0x45   : > { %1055 = vmatmul.mubr.f32.vlgmr.msra.gmra.mrb[0].mxu1 %v1487_v47  ;;  %v933_v47 = vld [vmem:[%s1592_s3] ss:$0 sm:$0xff] }
  0xa7   : > { %v204_v13 = vpop.xlane.xlu0 %203 }
  0xa8   : > { %v216_v25 = vmul.f32 0.015625, %v204_v13 }
  0xaa   : > { %v212_v17 = vpop.xlane.xlu1 %211  ;;  %v220_v27 = vmul.f32 %v216_v25, %v216_v25  ;;  %v831_v44 = vmul.f32 %v932_v36, %v216_v25 }
  0xab   : > { %v207_v20 = vpop.xlane.xlu0 %206  ;;  %v218_v29 = vmul.f32 0.015625, %v212_v17 }
  0xac   : > { %v217_v22 = vmul.f32 0.015625, %v207_v20 }
  0xad   : > { %v222_v32 = vsub.f32 %v218_v29, %v220_v27 }
  0xae   : > { %v215_v24 = vpop.xlane.xlu1 %214  ;;  %v221_v26 = vmul.f32 %v217_v22, %v217_v22  ;;  %v832_v39 = vmul.f32 %v932_v36, %v217_v22 }
  0xaf   : > { %v219_v28 = vmul.f32 0.015625, %v215_v24  ;;  %v224_v34 = vmax.f32 %v222_v32, 0.0 }
  0xb1   : > { %v223_v31 = vsub.f32 %v219_v28, %v221_v26  ;;  %v226_v35 = vadd.f32 1e-05, %v224_v34 }
  0xb3   : > { %v225_v33 = vmax.f32 %v223_v31, 0.0 }
  0xb5   : > { %v227_v30 = vadd.f32 1e-05, %v225_v33 }
  0xb7   : > { %1261 = vrsqrt.f32 %v227_v30 }
  0xb8   : > { %1263 = vrsqrt.f32 %v226_v35 }
  0xc1   : > { %v1262_v43 = vpop.eup %1261 }
  0xc2   : > { %v1264_v49 = vpop.eup %1263 }
 0x115   : > { %v1113_v38 = vpop.f32.mrb[0].mxu0 }
 0x116   : > { %v814_v42 = vpop.f32.mrb[1].mxu0 }
 0x118   : > { %v1056_v37 = vpop.f32.mrb[0].mxu1 }
 0x119   : > { %v1210_v40 = vadd.f32 %v1113_v38, %v1056_v37  ;;  %v538_v41 = vpop.f32.mrb[1].mxu1 }
 0x11a   : > { %v1211_v45 = vadd.f32 %v814_v42, %v538_v41 }
 0x11b   : > { %v834_v46 = vsub.f32 %v1210_v40, %v832_v39 }
 0x11c   : > { %v833_v48 = vsub.f32 %v1211_v45, %v831_v44 }
 0x11d   : > { %v836_v50 = vmul.f32 %v1262_v43, %v834_v46 }
 0x11e   : > { %v835_v51 = vmul.f32 %v1264_v49, %v833_v48 }
 0x11f   : > { %v845_v52 = vadd.f32 %v933_v47, %v836_v50 }
 0x120   : > { %v844_v53 = vadd.f32 %v933_v47, %v835_v51 }
 0x121   : > { %848 = vst.msk [vmem:[%s191_s12 + $0x8] sm:$0xff] %vm846_vm1, %v845_v52 }
 0x122   : > { %847 = vst.msk [vmem:[%s191_s12] sm:$0xff] %vm846_vm1, %v844_v53 }
 0x123   : > { %1278 = shalt.err (!%p1275_p3)
}
 0x124   : > { %s1279_s30 = scalar_lea.hbm %s1544_s22, 256  ;;  %s1283_s7 = scalar_lea.hbm %s1593_s4, 512 }
 0x125   : > { %p1280_p4 = scmp.ne.s32.totalorder %s1544_s22, %s1279_s30  ;;  %p1284_p9 = scmp.lt.u32.totalorder %s1544_s22, %s1593_s4 }
 0x126   : > { %p1285_p10 = scmp.lt.u32.totalorder %s1283_s7, %s1279_s30  ;;  %p1287_p12 = scmp.lt.u32.totalorder %s1279_s30, %s1544_s22 }
 0x127   : > { %p1281_p7 = pnand %p1280_p4, %p1395_p5 }
 0x128   : > { %p1286_p11 = por %p1285_p10, %p1284_p9 }
 0x129   : > { %p1282_p8 = pneg %p1281_p7 }
 0x12a   : > { %p1288_p13 = por %p1287_p12, %p1286_p11 }
 0x12c   : > { %p1289_p0 = pnand %p1288_p13, %p1282_p8 }
 0x12e   : > { %1292 = shalt.err (!%p1289_p0)
}
 0x12f   : > { %s1330_s10 = smov 128   ;;  %s1331_s11 = smov 8  }
 0x130   : > { %1220 = dma.vmem_to_hbm [thread:$0]  (%p1395_p5), %s1546_s13, 256, %s1544_s22, %s1548_s19, %s1330_s10, %s1330_s10, %s1331_s11  }
 0x131 PF: > { %p1226_p1 = scmp.ge.s32.totalorder %s1327_s18, 2  ;;  %s878_s12 = sand.u32 1, %s1315_s15  }
 0x132   : > { %s879_s14 = scalar_lea.sflag [#allocation3], %s878_s12 }
 0x133   : > { %p1223_p2 = pnand %p1226_p1, %p1399_p6 }
 0x135   : > { %1310 = dma.done.wait (!%p1223_p2), %s879_s14, 256  }
 0x136   : > { %1312 = vsyncadd (!%p1223_p2), %s879_s14, 4294967040  ;;  %p14_p3 = scmp.ge.s32.totalorder %s1382_s21, 4   ;;  %s1596_s15 = smov %s1319_s16 }
 0x137   : > { %s1597_s16 = smov %s1323_s17  ;;  %s1598_s17 = smov %s1393_s24 }
 0x138   : > { %s1599_s18 = smov %s1382_s21  ;;  %16 = sbr.rel (!%p14_p3) target bundleno = 3 (0x3), region = 71 }
 0x13f   :  { %884 = vsyncpa [#allocation3], 1 }
 0x140   :  { %886 = vsyncpa [#allocation3 + $0x1], 1 }

</bundles_post_ra>
